<compile_context>
chip_gen: v6e
topology: v6e:2x2x1
jax: 0.10.0
libtpu: 0.0.40
codegen_flags: <defaults>
</compile_context>

<pallas_src>
import numpy as np
import jax
import jax.numpy as jnp
from jax.experimental import pallas as pl
from jax.experimental.pallas import tpu as pltpu

EPS = 1e-5  # PyTorch BatchNorm default eps


# ------------------------------- wrapper ------------------------------------
def mcpx_pallas(x_nchw, p, num_paths, hid_ch, out_ch, max_tile_pixels=2048):
    B, Cin, H, W = x_nchw.shape
    HW = H * W
    PH = num_paths * hid_ch
    Cout = out_ch

    # spatial tiling: tile size multiple of 128, HW padded up to a tile multiple
    THW = min(max(128, (max_tile_pixels // 128) * 128),
              ((HW + 127) // 128) * 128)
    HW_pad = ((HW + THW - 1) // THW) * THW
    T = HW_pad // THW
    PAD = ((W + 1 + 127) // 128) * 128          # halo pad, >= W+1, lane-aligned
    L = HW_pad + 2 * PAD
    need_valid = HW_pad != HW

    # ---- glue: flattened bf16 zero-padded input (image lives at [PAD, PAD+HW))
    xbf = x_nchw.astype(jnp.bfloat16).reshape(B, Cin, HW)
    xflat = jnp.pad(xbf, ((0, 0), (0, 0), (PAD, L - HW - PAD)))

    # ---- glue: hoisted path-attention (global pool -> 1x1 conv -> softmax) ---
    pool = jnp.mean(x_nchw.astype(jnp.float32), axis=(2, 3))   # (B, Cin)
    logits = pool @ p["attn_w"][:, :, 0, 0].T + p["attn_b"][None, :]
    wpaths = jax.nn.softmax(logits, axis=-1)                   # (B, P)
    path_scale = jnp.repeat(wpaths, hid_ch, axis=1)            # (B, PH), >= 0

    # ---- path conv weights as (PH, 9*Cin), tap-major columns (k = ky*3+kx) --
    w_stack = jnp.stack(p["path_w"], axis=0).reshape(PH, Cin, 3, 3)
    w_path_all = jnp.transpose(w_stack, (0, 2, 3, 1)).reshape(PH, 9 * Cin)
    w_path_all = w_path_all.astype(jnp.bfloat16)

    # ---- fold conv bias + eval BN (+ per-batch path weight) into scale/bias --
    scale_l, bias_l = [], []
    for i in range(num_paths):
        s_ = p["path_gamma"][i] / jnp.sqrt(p["path_var"][i] + EPS)
        t_ = s_ * (p["path_b"][i] - p["path_mean"][i]) + p["path_beta"][i]
        scale_l.append(s_)
        bias_l.append(t_)
    scale_vec = jnp.concatenate(scale_l)                       # (PH,)
    bias_vec = jnp.concatenate(bias_l)                         # (PH,)
    # ReLU(a)*w == ReLU(a*w) for w >= 0, so the path weight folds exactly
    sb = jnp.stack([scale_vec[None, :] * path_scale,
                    bias_vec[None, :] * path_scale], axis=-1)  # (B, PH, 2) f32

    sm = p["merge_gamma"] / jnp.sqrt(p["merge_var"] + EPS)
    w_merge = (p["merge_w"][:, :, 0, 0] * sm[:, None]).astype(jnp.bfloat16)
    bias_m = sm * (p["merge_b"] - p["merge_mean"]) + p["merge_beta"]
    w_res = p["res_w"][:, :, 0, 0].astype(jnp.bfloat16)        # (Cout, Cin)
    bias2 = jnp.stack([bias_m, p["res_b"]], axis=-1).astype(jnp.float32)

    # ---- ECA 3-tap channel conv as tridiagonal matrix, 1/HW folded in -------
    k3 = p["eca_w"].reshape(3)
    eca_mat = ((k3[1] * jnp.eye(Cout) + k3[0] * jnp.eye(Cout, k=-1)
                + k3[2] * jnp.eye(Cout, k=1)) / float(HW)).astype(jnp.float32)

    # ---- column-wrap masks (dx=-1, dx=+1) and valid-pixel mask --------------
    pidx = jnp.arange(HW_pad, dtype=jnp.int32)
    col = pidx % W
    masks = jnp.stack([(col != 0), (col != W - 1),
                       (pidx < HW)]).astype(jnp.float32)       # (3, HW_pad)

    # ------------------------------ kernel -----------------------------------
    def kernel(x_ref, mask_ref, sb_ref, w_path_ref, w_merge_ref, bias2_ref,
               w_res_ref, eca_ref, out_ref, merged_ref, acc_ref):
        s = pl.program_id(1)
        t = pl.program_id(2)
        pix0 = pl.multiple_of(t * THW, 128)

        @pl.when(s == 0)
        def _compute_merged():
            @pl.when(t == 0)
            def _():
                acc_ref[...] = jnp.zeros_like(acc_ref)

            # aligned halo window around this tile (from the resident image)
            win = x_ref[0, :, pl.ds(pix0, THW + 2 * PAD)]      # (Cin, THW+2PAD)
            wp = w_path_ref[...]                               # (PH, 9*Cin) bf16
            mk = mask_ref[...]                                 # (3, THW) f32

            # 3x3 conv = 9 shifted matmuls, grouped by horizontal offset dx
            z = jnp.zeros((PH, THW), jnp.float32)
            for dxi in range(3):
                g = jnp.zeros((PH, THW), jnp.float32)
                for dyi in range(3):
                    kk = dyi * 3 + dxi
                    sh = (dyi - 1) * W + (dxi - 1)
                    patch = win[:, PAD + sh: PAD + sh + THW]   # (Cin, THW)
                    g += jnp.dot(wp[:, kk * Cin:(kk + 1) * Cin], patch,
                                 preferred_element_type=jnp.float32)
                if dxi == 0:
                    g = g * mk[0:1, :]                         # left-edge mask
                elif dxi == 2:
                    g = g * mk[1:2, :]                         # right-edge mask
                z = z + g

            sbv = sb_ref[0]                                    # (PH, 2)
            weighted = jnp.maximum(z * sbv[:, 0:1] + sbv[:, 1:2], 0.0)
            merged = jnp.dot(w_merge_ref[...], weighted.astype(jnp.bfloat16),
                             preferred_element_type=jnp.float32)
            merged = jnp.maximum(merged + bias2_ref[:, 0:1], 0.0)
            merged_ref[:, pl.ds(pix0, THW)] = merged

            # per-channel partial sums for ECA (XLU lane reduce)
            msum = merged * mk[2:3, :] if need_valid else merged
            acc_ref[...] += jnp.sum(msum, axis=-1, keepdims=True)

        @pl.when(s == 1)
        def _apply_gate_residual():
            # channel sums -> ECA sigmoid gate, once per image
            @pl.when(t == 0)
            def _():
                y = jnp.dot(eca_ref[...], acc_ref[...],
                            preferred_element_type=jnp.float32)
                acc_ref[...] = jax.nn.sigmoid(y)               # reuse as gate

            gate = acc_ref[...]                                # (Cout, 1)
            xc = x_ref[0, :, pl.ds(pl.multiple_of(pix0 + PAD, 128), THW)]
            res = jnp.dot(w_res_ref[...], xc,
                          preferred_element_type=jnp.float32)  # (Cout, THW)
            out_ref[0] = (merged_ref[:, pl.ds(pix0, THW)] * gate
                          + res + bias2_ref[:, 1:2])

    # ------------------------------ specs ------------------------------------
    in_specs = [
        pl.BlockSpec((1, Cin, L), lambda b, s, t: (b, 0, 0)),       # resident x
        pl.BlockSpec((3, THW), lambda b, s, t: (0, t)),             # masks
        pl.BlockSpec((1, PH, 2), lambda b, s, t: (b, 0, 0)),        # scale/bias
        pl.BlockSpec((PH, 9 * Cin), lambda b, s, t: (0, 0)),        # path W
        pl.BlockSpec((Cout, PH), lambda b, s, t: (0, 0)),           # merge W
        pl.BlockSpec((Cout, 2), lambda b, s, t: (0, 0)),            # biases
        pl.BlockSpec((Cout, Cin), lambda b, s, t: (0, 0)),          # residual W
        pl.BlockSpec((Cout, Cout), lambda b, s, t: (0, 0)),         # ECA matrix
    ]
    # s*t trick: sweep-0 steps alias block 0 -> each out block written once
    out_specs = pl.BlockSpec((1, Cout, THW), lambda b, s, t: (b, 0, s * t))

    # explicit scoped-VMEM budget from actual block / scratch sizes
    vmem_est = (2 * Cin * L * 2 + 2 * 3 * THW * 4 + 2 * PH * 2 * 4
                + 2 * PH * 9 * Cin * 2 + 2 * Cout * PH * 2 + 2 * Cout * 2 * 4
                + 2 * Cout * Cin * 2 + 2 * Cout * Cout * 4
                + 2 * Cout * THW * 4 + Cout * HW_pad * 4 + Cout * 4)
    vmem_limit = int(min(max(2 * vmem_est + (1 << 20), 16 << 20), 64 << 20))

    flops = int(2 * B * HW_pad * (9 * Cin * PH + PH * Cout + Cin * Cout)
                + 6 * B * Cout * HW_pad)
    bytes_acc = int(B * Cin * L * 2 + B * Cout * HW_pad * 4 + 3 * HW_pad * 4
                    + B * PH * 2 * 4
                    + (PH * 9 * Cin + Cout * PH + Cout * Cin) * 2
                    + (Cout * 2 + Cout * Cout) * 4)

    out = pl.pallas_call(
        kernel,
        out_shape=jax.ShapeDtypeStruct((B, Cout, HW_pad), jnp.float32),
        grid=(B, 2, T),
        in_specs=in_specs,
        out_specs=out_specs,
        scratch_shapes=[pltpu.VMEM((Cout, HW_pad), jnp.float32),   # merged
                        pltpu.VMEM((Cout, 1), jnp.float32)],       # sums/gate
        compiler_params=pltpu.CompilerParams(
            dimension_semantics=("parallel", "arbitrary", "arbitrary"),
            vmem_limit_bytes=vmem_limit),
        cost_estimate=pl.CostEstimate(flops=flops,
                                      transcendentals=int(B * Cout),
                                      bytes_accessed=bytes_acc),
    )(xflat, masks, sb, w_path_all, w_merge, bias2, w_res, eca_mat)

    if need_valid:
        out = out[:, :, :HW]
    return out.reshape(B, Cout, H, W)                          # already NCHW


# --------------------------- parameter init ----------------------------------
def make_params(key, in_ch, hid_ch, out_ch, num_paths):
    keys = jax.random.split(key, 32)
    it = iter(keys)

    def nrm(shape, scale=0.1):
        return scale * jax.random.normal(next(it), shape, dtype=jnp.float32)

    p = {}
    p["path_w"] = [nrm((hid_ch, in_ch, 3, 3)) for _ in range(num_paths)]
    p["path_b"] = [nrm((hid_ch,)) for _ in range(num_paths)]
    p["path_gamma"] = [1.0 + nrm((hid_ch,)) for _ in range(num_paths)]
    p["path_beta"] = [nrm((hid_ch,)) for _ in range(num_paths)]
    p["path_mean"] = [nrm((hid_ch,)) for _ in range(num_paths)]
    p["path_var"] = [jax.random.uniform(next(it), (hid_ch,), jnp.float32,
                                        0.5, 1.5) for _ in range(num_paths)]
    p["attn_w"] = nrm((num_paths, in_ch, 1, 1))
    p["attn_b"] = nrm((num_paths,))
    p["merge_w"] = nrm((out_ch, hid_ch * num_paths, 1, 1))
    p["merge_b"] = nrm((out_ch,))
    p["merge_gamma"] = 1.0 + nrm((out_ch,))
    p["merge_beta"] = nrm((out_ch,))
    p["merge_mean"] = nrm((out_ch,))
    p["merge_var"] = jax.random.uniform(next(it), (out_ch,), jnp.float32,
                                        0.5, 1.5)
    p["eca_w"] = nrm((1, 1, 3), scale=0.5)
    p["res_w"] = nrm((out_ch, in_ch, 1, 1))
    p["res_b"] = nrm((out_ch,))
    return p


# ---------------------------- pure-JAX reference -----------------------------
def reference_mcpx(x, p, num_paths, hid_ch, out_ch):
    def conv2d(x, w, b=None, pad=0):
        out = jax.lax.conv_general_dilated(
            x, w, window_strides=(1, 1),
            padding=((pad, pad), (pad, pad)),
            dimension_numbers=('NCHW', 'OIHW', 'NCHW'))
        if b is not None:
            out = out + b[None, :, None, None]
        return out

    def bn(x, g, bta, m, v):
        return ((x - m[None, :, None, None])
                / jnp.sqrt(v[None, :, None, None] + EPS)
                * g[None, :, None, None] + bta[None, :, None, None])

    pool = jnp.mean(x, axis=(2, 3), keepdims=True)
    w = jax.nn.softmax(conv2d(pool, p["attn_w"], p["attn_b"]), axis=1)
    outs = []
    for i in range(num_paths):
        o = conv2d(x, p["path_w"][i], p["path_b"][i], pad=1)
        o = jax.nn.relu(bn(o, p["path_gamma"][i], p["path_beta"][i],
                           p["path_mean"][i], p["path_var"][i]))
        outs.append(o * w[:, i:i + 1])
    cat = jnp.concatenate(outs, axis=1)
    merged = conv2d(cat, p["merge_w"], p["merge_b"])
    merged = jax.nn.relu(bn(merged, p["merge_gamma"], p["merge_beta"],
                            p["merge_mean"], p["merge_var"]))
    m = jnp.mean(merged, axis=(2, 3))
    mp = jnp.pad(m, ((0, 0), (1, 1)))
    k = p["eca_w"][0, 0]
    C = out_ch
    y = k[0] * mp[:, 0:C] + k[1] * mp[:, 1:C + 1] + k[2] * mp[:, 2:C + 2]
    gate = jax.nn.sigmoid(y)[:, :, None, None]
    res = conv2d(x, p["res_w"], p["res_b"])
    return merged * gate + res


if __name__ == "__main__":
    B, Cin, H, W = 2, 4, 16, 16
    hid_ch, out_ch, num_paths = 8, 8, 2

    key = jax.random.PRNGKey(0)
    kx, kp = jax.random.split(key)
    x = jax.random.normal(kx, (B, Cin, H, W), dtype=jnp.float32)
    params = make_params(kp, Cin, hid_ch, out_ch, num_paths)

    # max_tile_pixels=128 -> 2 spatial tiles per image at 16x16, exercising the
    # two-sweep (accumulate sums, then gate+residual) path with T > 1.
    out = mcpx_pallas(x, params, num_paths, hid_ch, out_ch, max_tile_pixels=128)
    out = jax.block_until_ready(out)

    ref = reference_mcpx(x, params, num_paths, hid_ch, out_ch)
    # bf16 MXU operands (f32 accumulation) -> looser tolerance than pure f32
    np.testing.assert_allclose(np.asarray(out), np.asarray(ref),
                               rtol=2e-2, atol=2e-2)
    print("KERNEL_OK")
</pallas_src>

<mosaic_0001>
module attributes {stable_mosaic.version = 11 : i64} {
  func.func @kernel(%arg0: i32, %arg1: i32, %arg2: i32, %arg3: memref<1x4x512xbf16, #tpu.memory_space<vmem>>, %arg4: memref<3x128xf32, #tpu.memory_space<vmem>>, %arg5: memref<1x16x2xf32, #tpu.memory_space<vmem>>, %arg6: memref<16x36xbf16, #tpu.memory_space<vmem>>, %arg7: memref<8x16xbf16, #tpu.memory_space<vmem>>, %arg8: memref<8x2xf32, #tpu.memory_space<vmem>>, %arg9: memref<8x4xbf16, #tpu.memory_space<vmem>>, %arg10: memref<8x8xf32, #tpu.memory_space<vmem>>, %arg11: memref<1x8x128xf32, #tpu.memory_space<vmem>>, %arg12: memref<8x256xf32, #tpu.memory_space<vmem>>, %arg13: memref<8x1xf32, #tpu.memory_space<vmem>>) attributes {dimension_semantics = [#tpu.dimension_semantics<parallel>, #tpu.dimension_semantics<arbitrary>, #tpu.dimension_semantics<arbitrary>], iteration_bounds = array<i64: 2, 2, 2>, scalar_prefetch = 0 : i64, scratch_operands = 2 : i64, tpu.core_type = #tpu.core_type<tc>, window_params = [{transform_indices = @transform_0, window_bounds = array<i64: 1, 4, 512>}, {transform_indices = @transform_1, window_bounds = array<i64: 3, 128>}, {transform_indices = @transform_2, window_bounds = array<i64: 1, 16, 2>}, {pipeline_mode = #tpu.pipeline_mode<synchronous>, transform_indices = @transform_3, window_bounds = array<i64: 16, 36>}, {pipeline_mode = #tpu.pipeline_mode<synchronous>, transform_indices = @transform_4, window_bounds = array<i64: 8, 16>}, {pipeline_mode = #tpu.pipeline_mode<synchronous>, transform_indices = @transform_5, window_bounds = array<i64: 8, 2>}, {pipeline_mode = #tpu.pipeline_mode<synchronous>, transform_indices = @transform_6, window_bounds = array<i64: 8, 4>}, {pipeline_mode = #tpu.pipeline_mode<synchronous>, transform_indices = @transform_7, window_bounds = array<i64: 8, 8>}, {transform_indices = @transform_8, window_bounds = array<i64: 1, 8, 128>}]} {
    %c128_i32 = arith.constant 128 : i32
    %0 = arith.muli %arg2, %c128_i32 : i32
    %1 = tpu.assume_multiple %0, 128 : i32
    %c0_i32 = arith.constant 0 : i32
    %2 = arith.cmpi eq, %arg1, %c0_i32 : i32
    %3 = arith.extui %2 : i1 to i32
    %c0_i32_0 = arith.constant 0 : i32
    %4 = arith.cmpi ne, %3, %c0_i32_0 : i32
    scf.if %4 {
      %c0_i32_2 = arith.constant 0 : i32
      %8 = arith.cmpi eq, %arg2, %c0_i32_2 : i32
      %9 = arith.extui %8 : i1 to i32
      %c0_i32_3 = arith.constant 0 : i32
      %10 = arith.cmpi ne, %9, %c0_i32_3 : i32
      scf.if %10 {
        %cst_37 = arith.constant 0.000000e+00 : f32
        %90 = vector.broadcast %cst_37 : f32 to vector<8x1xf32>
        %c0_38 = arith.constant 0 : index
        %c0_39 = arith.constant 0 : index
        %91 = vector.load %arg13[%c0_38, %c0_39] : memref<8x1xf32, #tpu.memory_space<vmem>>, vector<8x1xf32>
        tpu.vector_store %arg13[%c0_38, %c0_39], %90 {strides = array<i32>} : memref<8x1xf32, #tpu.memory_space<vmem>>, vector<8x1xf32>,
      } else {
      }
      %c0 = arith.constant 0 : index
      %c0_4 = arith.constant 0 : index
      %11 = arith.index_cast %1 : i32 to index
      %12 = vector.load %arg3[%c0, %c0_4, %11] : memref<1x4x512xbf16, #tpu.memory_space<vmem>>, vector<1x4x384xbf16>
      %13 = vector.shape_cast %12 : vector<1x4x384xbf16> to vector<4x384xbf16>
      %c0_5 = arith.constant 0 : index
      %c0_6 = arith.constant 0 : index
      %14 = vector.load %arg6[%c0_5, %c0_6] : memref<16x36xbf16, #tpu.memory_space<vmem>>, vector<16x36xbf16>
      %c0_7 = arith.constant 0 : index
      %c0_8 = arith.constant 0 : index
      %15 = vector.load %arg4[%c0_7, %c0_8] : memref<3x128xf32, #tpu.memory_space<vmem>>, vector<3x128xf32>
      %cst = arith.constant 0.000000e+00 : f32
      %16 = vector.broadcast %cst : f32 to vector<16x128xf32>
      %cst_9 = arith.constant 0.000000e+00 : f32
      %17 = vector.broadcast %cst_9 : f32 to vector<16x128xf32>
      %18 = vector.extract_strided_slice %13 {offsets = [0, 111], sizes = [4, 128], strides = [1, 1]} : vector<4x384xbf16> to vector<4x128xbf16>
      %19 = vector.extract_strided_slice %14 {offsets = [0, 0], sizes = [16, 4], strides = [1, 1]} : vector<16x36xbf16> to vector<16x4xbf16>
      %cst_10 = arith.constant dense<0.000000e+00> : vector<16x128xf32>
      %20 = tpu.matmul %19, %18, %cst_10 {dimension_numbers = #tpu.dot_dimension_numbers<[1], [0], [0], [1], [0, 0, 1, 1], [], []>} : vector<16x4xbf16>, vector<4x128xbf16>, vector<16x128xf32> -> vector<16x128xf32>
      %21 = arith.addf %17, %20 : vector<16x128xf32>
      %22 = vector.extract_strided_slice %13 {offsets = [0, 127], sizes = [4, 128], strides = [1, 1]} : vector<4x384xbf16> to vector<4x128xbf16>
      %23 = vector.extract_strided_slice %14 {offsets = [0, 12], sizes = [16, 4], strides = [1, 1]} : vector<16x36xbf16> to vector<16x4xbf16>
      %cst_11 = arith.constant dense<0.000000e+00> : vector<16x128xf32>
      %24 = tpu.matmul %23, %22, %cst_11 {dimension_numbers = #tpu.dot_dimension_numbers<[1], [0], [0], [1], [0, 0, 1, 1], [], []>} : vector<16x4xbf16>, vector<4x128xbf16>, vector<16x128xf32> -> vector<16x128xf32>
      %25 = arith.addf %21, %24 : vector<16x128xf32>
      %26 = vector.extract_strided_slice %13 {offsets = [0, 143], sizes = [4, 128], strides = [1, 1]} : vector<4x384xbf16> to vector<4x128xbf16>
      %27 = vector.extract_strided_slice %14 {offsets = [0, 24], sizes = [16, 4], strides = [1, 1]} : vector<16x36xbf16> to vector<16x4xbf16>
      %cst_12 = arith.constant dense<0.000000e+00> : vector<16x128xf32>
      %28 = tpu.matmul %27, %26, %cst_12 {dimension_numbers = #tpu.dot_dimension_numbers<[1], [0], [0], [1], [0, 0, 1, 1], [], []>} : vector<16x4xbf16>, vector<4x128xbf16>, vector<16x128xf32> -> vector<16x128xf32>
      %29 = arith.addf %25, %28 : vector<16x128xf32>
      %30 = vector.extract_strided_slice %15 {offsets = [0, 0], sizes = [1, 128], strides = [1, 1]} : vector<3x128xf32> to vector<1x128xf32>
      %31 = vector.broadcast %30 : vector<1x128xf32> to vector<16x128xf32>
      %32 = arith.mulf %29, %31 : vector<16x128xf32>
      %33 = arith.addf %16, %32 : vector<16x128xf32>
      %cst_13 = arith.constant 0.000000e+00 : f32
      %34 = vector.broadcast %cst_13 : f32 to vector<16x128xf32>
      %35 = vector.extract_strided_slice %13 {offsets = [0, 112], sizes = [4, 128], strides = [1, 1]} : vector<4x384xbf16> to vector<4x128xbf16>
      %36 = vector.extract_strided_slice %14 {offsets = [0, 4], sizes = [16, 4], strides = [1, 1]} : vector<16x36xbf16> to vector<16x4xbf16>
      %cst_14 = arith.constant dense<0.000000e+00> : vector<16x128xf32>
      %37 = tpu.matmul %36, %35, %cst_14 {dimension_numbers = #tpu.dot_dimension_numbers<[1], [0], [0], [1], [0, 0, 1, 1], [], []>} : vector<16x4xbf16>, vector<4x128xbf16>, vector<16x128xf32> -> vector<16x128xf32>
      %38 = arith.addf %34, %37 : vector<16x128xf32>
      %39 = vector.extract_strided_slice %13 {offsets = [0, 128], sizes = [4, 128], strides = [1, 1]} : vector<4x384xbf16> to vector<4x128xbf16>
      %40 = vector.extract_strided_slice %14 {offsets = [0, 16], sizes = [16, 4], strides = [1, 1]} : vector<16x36xbf16> to vector<16x4xbf16>
      %cst_15 = arith.constant dense<0.000000e+00> : vector<16x128xf32>
      %41 = tpu.matmul %40, %39, %cst_15 {dimension_numbers = #tpu.dot_dimension_numbers<[1], [0], [0], [1], [0, 0, 1, 1], [], []>} : vector<16x4xbf16>, vector<4x128xbf16>, vector<16x128xf32> -> vector<16x128xf32>
      %42 = arith.addf %38, %41 : vector<16x128xf32>
      %43 = vector.extract_strided_slice %13 {offsets = [0, 144], sizes = [4, 128], strides = [1, 1]} : vector<4x384xbf16> to vector<4x128xbf16>
      %44 = vector.extract_strided_slice %14 {offsets = [0, 28], sizes = [16, 4], strides = [1, 1]} : vector<16x36xbf16> to vector<16x4xbf16>
      %cst_16 = arith.constant dense<0.000000e+00> : vector<16x128xf32>
      %45 = tpu.matmul %44, %43, %cst_16 {dimension_numbers = #tpu.dot_dimension_numbers<[1], [0], [0], [1], [0, 0, 1, 1], [], []>} : vector<16x4xbf16>, vector<4x128xbf16>, vector<16x128xf32> -> vector<16x128xf32>
      %46 = arith.addf %42, %45 : vector<16x128xf32>
      %47 = arith.addf %33, %46 : vector<16x128xf32>
      %cst_17 = arith.constant 0.000000e+00 : f32
      %48 = vector.broadcast %cst_17 : f32 to vector<16x128xf32>
      %49 = vector.extract_strided_slice %13 {offsets = [0, 113], sizes = [4, 128], strides = [1, 1]} : vector<4x384xbf16> to vector<4x128xbf16>
      %50 = vector.extract_strided_slice %14 {offsets = [0, 8], sizes = [16, 4], strides = [1, 1]} : vector<16x36xbf16> to vector<16x4xbf16>
      %cst_18 = arith.constant dense<0.000000e+00> : vector<16x128xf32>
      %51 = tpu.matmul %50, %49, %cst_18 {dimension_numbers = #tpu.dot_dimension_numbers<[1], [0], [0], [1], [0, 0, 1, 1], [], []>} : vector<16x4xbf16>, vector<4x128xbf16>, vector<16x128xf32> -> vector<16x128xf32>
      %52 = arith.addf %48, %51 : vector<16x128xf32>
      %53 = vector.extract_strided_slice %13 {offsets = [0, 129], sizes = [4, 128], strides = [1, 1]} : vector<4x384xbf16> to vector<4x128xbf16>
      %54 = vector.extract_strided_slice %14 {offsets = [0, 20], sizes = [16, 4], strides = [1, 1]} : vector<16x36xbf16> to vector<16x4xbf16>
      %cst_19 = arith.constant dense<0.000000e+00> : vector<16x128xf32>
      %55 = tpu.matmul %54, %53, %cst_19 {dimension_numbers = #tpu.dot_dimension_numbers<[1], [0], [0], [1], [0, 0, 1, 1], [], []>} : vector<16x4xbf16>, vector<4x128xbf16>, vector<16x128xf32> -> vector<16x128xf32>
      %56 = arith.addf %52, %55 : vector<16x128xf32>
      %57 = vector.extract_strided_slice %13 {offsets = [0, 145], sizes = [4, 128], strides = [1, 1]} : vector<4x384xbf16> to vector<4x128xbf16>
      %58 = vector.extract_strided_slice %14 {offsets = [0, 32], sizes = [16, 4], strides = [1, 1]} : vector<16x36xbf16> to vector<16x4xbf16>
      %cst_20 = arith.constant dense<0.000000e+00> : vector<16x128xf32>
      %59 = tpu.matmul %58, %57, %cst_20 {dimension_numbers = #tpu.dot_dimension_numbers<[1], [0], [0], [1], [0, 0, 1, 1], [], []>} : vector<16x4xbf16>, vector<4x128xbf16>, vector<16x128xf32> -> vector<16x128xf32>
      %60 = arith.addf %56, %59 : vector<16x128xf32>
      %61 = vector.extract_strided_slice %15 {offsets = [1, 0], sizes = [1, 128], strides = [1, 1]} : vector<3x128xf32> to vector<1x128xf32>
      %62 = vector.broadcast %61 : vector<1x128xf32> to vector<16x128xf32>
      %63 = arith.mulf %60, %62 : vector<16x128xf32>
      %64 = arith.addf %47, %63 : vector<16x128xf32>
      %c0_21 = arith.constant 0 : index
      %c0_22 = arith.constant 0 : index
      %c0_23 = arith.constant 0 : index
      %65 = vector.load %arg5[%c0_21, %c0_22, %c0_23] : memref<1x16x2xf32, #tpu.memory_space<vmem>>, vector<1x16x2xf32>
      %66 = vector.shape_cast %65 : vector<1x16x2xf32> to vector<16x2xf32>
      %67 = vector.extract_strided_slice %66 {offsets = [0, 0], sizes = [16, 1], strides = [1, 1]} : vector<16x2xf32> to vector<16x1xf32>
      %68 = vector.broadcast %67 : vector<16x1xf32> to vector<16x128xf32>
      %69 = arith.mulf %64, %68 : vector<16x128xf32>
      %70 = vector.extract_strided_slice %66 {offsets = [0, 1], sizes = [16, 1], strides = [1, 1]} : vector<16x2xf32> to vector<16x1xf32>
      %71 = vector.broadcast %70 : vector<16x1xf32> to vector<16x128xf32>
      %72 = arith.addf %69, %71 : vector<16x128xf32>
      %cst_24 = arith.constant 0.000000e+00 : f32
      %73 = vector.broadcast %cst_24 : f32 to vector<16x128xf32>
      %74 = arith.maximumf %72, %73 : vector<16x128xf32>
      %c0_25 = arith.constant 0 : index
      %c0_26 = arith.constant 0 : index
      %75 = vector.load %arg7[%c0_25, %c0_26] : memref<8x16xbf16, #tpu.memory_space<vmem>>, vector<8x16xbf16>
      %76 = arith.truncf %74 : vector<16x128xf32> to vector<16x128xbf16>
      %cst_27 = arith.constant dense<0.000000e+00> : vector<8x128xf32>
      %77 = tpu.matmul %75, %76, %cst_27 {dimension_numbers = #tpu.dot_dimension_numbers<[1], [0], [0], [1], [0, 0, 1, 1], [], []>} : vector<8x16xbf16>, vector<16x128xbf16>, vector<8x128xf32> -> vector<8x128xf32>
      %c0_28 = arith.constant 0 : index
      %c0_29 = arith.constant 0 : index
      %78 = vector.load %arg8[%c0_28, %c0_29] : memref<8x2xf32, #tpu.memory_space<vmem>>, vector<8x1xf32>
      %79 = vector.broadcast %78 : vector<8x1xf32> to vector<8x128xf32>
      %80 = arith.addf %77, %79 : vector<8x128xf32>
      %cst_30 = arith.constant 0.000000e+00 : f32
      %81 = vector.broadcast %cst_30 : f32 to vector<8x128xf32>
      %82 = arith.maximumf %80, %81 : vector<8x128xf32>
      %c0_31 = arith.constant 0 : index
      %83 = arith.index_cast %1 : i32 to index
      %84 = vector.load %arg12[%c0_31, %83] : memref<8x256xf32, #tpu.memory_space<vmem>>, vector<8x128xf32>
      tpu.vector_store %arg12[%c0_31, %83], %82 {strides = array<i32>} : memref<8x256xf32, #tpu.memory_space<vmem>>, vector<8x128xf32>,
      %c0_32 = arith.constant 0 : index
      %c0_33 = arith.constant 0 : index
      %85 = vector.load %arg13[%c0_32, %c0_33] : memref<8x1xf32, #tpu.memory_space<vmem>>, vector<8x1xf32>
      %cst_34 = arith.constant dense<0.000000e+00> : vector<8xf32>
      %86 = vector.multi_reduction <add>, %82, %cst_34 [1] : vector<8x128xf32> to vector<8xf32>
      %87 = vector.shape_cast %86 : vector<8xf32> to vector<8x1xf32>
      %88 = arith.addf %85, %87 : vector<8x1xf32>
      %c0_35 = arith.constant 0 : index
      %c0_36 = arith.constant 0 : index
      %89 = vector.load %arg13[%c0_35, %c0_36] : memref<8x1xf32, #tpu.memory_space<vmem>>, vector<8x1xf32>
      tpu.vector_store %arg13[%c0_35, %c0_36], %88 {strides = array<i32>} : memref<8x1xf32, #tpu.memory_space<vmem>>, vector<8x1xf32>,
    } else {
    }
    %c1_i32 = arith.constant 1 : i32
    %5 = arith.cmpi eq, %arg1, %c1_i32 : i32
    %6 = arith.extui %5 : i1 to i32
    %c0_i32_1 = arith.constant 0 : i32
    %7 = arith.cmpi ne, %6, %c0_i32_1 : i32
    scf.if %7 {
      %c0_i32_2 = arith.constant 0 : i32
      %8 = arith.cmpi eq, %arg2, %c0_i32_2 : i32
      %9 = arith.extui %8 : i1 to i32
      %c0_i32_3 = arith.constant 0 : i32
      %10 = arith.cmpi ne, %9, %c0_i32_3 : i32
      scf.if %10 {
        %c0_15 = arith.constant 0 : index
        %c0_16 = arith.constant 0 : index
        %30 = vector.load %arg10[%c0_15, %c0_16] : memref<8x8xf32, #tpu.memory_space<vmem>>, vector<8x8xf32>
        %c0_17 = arith.constant 0 : index
        %c0_18 = arith.constant 0 : index
        %31 = vector.load %arg13[%c0_17, %c0_18] : memref<8x1xf32, #tpu.memory_space<vmem>>, vector<8x1xf32>
        %cst_19 = arith.constant dense<0.000000e+00> : vector<8x1xf32>
        %32 = tpu.matmul %30, %31, %cst_19 {dimension_numbers = #tpu.dot_dimension_numbers<[1], [0], [0], [1], [0, 0, 1, 1], [], []>} : vector<8x8xf32>, vector<8x1xf32>, vector<8x1xf32> -> vector<8x1xf32>
        %33 = arith.negf %32 : vector<8x1xf32>
        %34 = math.exp %33 : vector<8x1xf32>
        %cst_20 = arith.constant 1.000000e+00 : f32
        %35 = vector.broadcast %cst_20 : f32 to vector<8x1xf32>
        %36 = arith.addf %35, %34 : vector<8x1xf32>
        %37 = arith.divf %35, %36 : vector<8x1xf32>
        %c0_21 = arith.constant 0 : index
        %c0_22 = arith.constant 0 : index
        %38 = vector.load %arg13[%c0_21, %c0_22] : memref<8x1xf32, #tpu.memory_space<vmem>>, vector<8x1xf32>
        tpu.vector_store %arg13[%c0_21, %c0_22], %37 {strides = array<i32>} : memref<8x1xf32, #tpu.memory_space<vmem>>, vector<8x1xf32>,
      } else {
      }
      %c0 = arith.constant 0 : index
      %c0_4 = arith.constant 0 : index
      %11 = vector.load %arg13[%c0, %c0_4] : memref<8x1xf32, #tpu.memory_space<vmem>>, vector<8x1xf32>
      %c128_i32_5 = arith.constant 128 : i32
      %12 = arith.addi %1, %c128_i32_5 : i32
      %13 = tpu.assume_multiple %12, 128 : i32
      %c0_6 = arith.constant 0 : index
      %c0_7 = arith.constant 0 : index
      %14 = arith.index_cast %13 : i32 to index
      %15 = vector.load %arg3[%c0_6, %c0_7, %14] : memref<1x4x512xbf16, #tpu.memory_space<vmem>>, vector<1x4x128xbf16>
      %16 = vector.shape_cast %15 : vector<1x4x128xbf16> to vector<4x128xbf16>
      %c0_8 = arith.constant 0 : index
      %c0_9 = arith.constant 0 : index
      %17 = vector.load %arg9[%c0_8, %c0_9] : memref<8x4xbf16, #tpu.memory_space<vmem>>, vector<8x4xbf16>
      %cst = arith.constant dense<0.000000e+00> : vector<8x128xf32>
      %18 = tpu.matmul %17, %16, %cst {dimension_numbers = #tpu.dot_dimension_numbers<[1], [0], [0], [1], [0, 0, 1, 1], [], []>} : vector<8x4xbf16>, vector<4x128xbf16>, vector<8x128xf32> -> vector<8x128xf32>
      %c0_10 = arith.constant 0 : index
      %19 = arith.index_cast %1 : i32 to index
      %20 = vector.load %arg12[%c0_10, %19] : memref<8x256xf32, #tpu.memory_space<vmem>>, vector<8x128xf32>
      %21 = vector.broadcast %11 : vector<8x1xf32> to vector<8x128xf32>
      %22 = arith.mulf %20, %21 : vector<8x128xf32>
      %23 = arith.addf %22, %18 : vector<8x128xf32>
      %c0_11 = arith.constant 0 : index
      %c1 = arith.constant 1 : index
      %24 = vector.load %arg8[%c0_11, %c1] : memref<8x2xf32, #tpu.memory_space<vmem>>, vector<8x1xf32>
      %25 = vector.broadcast %24 : vector<8x1xf32> to vector<8x128xf32>
      %26 = arith.addf %23, %25 : vector<8x128xf32>
      %c0_12 = arith.constant 0 : index
      %c0_13 = arith.constant 0 : index
      %c0_14 = arith.constant 0 : index
      %27 = vector.load %arg11[%c0_12, %c0_13, %c0_14] : memref<1x8x128xf32, #tpu.memory_space<vmem>>, vector<1x8x128xf32>
      %28 = vector.shape_cast %27 : vector<1x8x128xf32> to vector<8x128xf32>
      %29 = vector.shape_cast %26 : vector<8x128xf32> to vector<1x8x128xf32>
      tpu.vector_store %arg11[%c0_12, %c0_13, %c0_14], %29 {strides = array<i32>} : memref<1x8x128xf32, #tpu.memory_space<vmem>>, vector<1x8x128xf32>,
    } else {
    }
    return
  }
  func.func @transform_0(%arg0: i32, %arg1: i32, %arg2: i32) -> (i32, i32, i32) {
    %c0_i32 = arith.constant 0 : i32
    %c0_i32_0 = arith.constant 0 : i32
    %c0_i32_1 = arith.constant 0 : i32
    return %arg0, %c0_i32, %c0_i32_0 : i32, i32, i32
  }
  func.func @transform_1(%arg0: i32, %arg1: i32, %arg2: i32) -> (i32, i32) {
    %c0_i32 = arith.constant 0 : i32
    %c0_i32_0 = arith.constant 0 : i32
    return %c0_i32, %arg2 : i32, i32
  }
  func.func @transform_2(%arg0: i32, %arg1: i32, %arg2: i32) -> (i32, i32, i32) {
    %c0_i32 = arith.constant 0 : i32
    %c0_i32_0 = arith.constant 0 : i32
    %c0_i32_1 = arith.constant 0 : i32
    return %arg0, %c0_i32, %c0_i32_0 : i32, i32, i32
  }
  func.func @transform_3(%arg0: i32, %arg1: i32, %arg2: i32) -> (i32, i32) {
    %c0_i32 = arith.constant 0 : i32
    %c0_i32_0 = arith.constant 0 : i32
    %c0_i32_1 = arith.constant 0 : i32
    return %c0_i32, %c0_i32_0 : i32, i32
  }
  func.func @transform_4(%arg0: i32, %arg1: i32, %arg2: i32) -> (i32, i32) {
    %c0_i32 = arith.constant 0 : i32
    %c0_i32_0 = arith.constant 0 : i32
    %c0_i32_1 = arith.constant 0 : i32
    return %c0_i32, %c0_i32_0 : i32, i32
  }
  func.func @transform_5(%arg0: i32, %arg1: i32, %arg2: i32) -> (i32, i32) {
    %c0_i32 = arith.constant 0 : i32
    %c0_i32_0 = arith.constant 0 : i32
    %c0_i32_1 = arith.constant 0 : i32
    return %c0_i32, %c0_i32_0 : i32, i32
  }
  func.func @transform_6(%arg0: i32, %arg1: i32, %arg2: i32) -> (i32, i32) {
    %c0_i32 = arith.constant 0 : i32
    %c0_i32_0 = arith.constant 0 : i32
    %c0_i32_1 = arith.constant 0 : i32
    return %c0_i32, %c0_i32_0 : i32, i32
  }
  func.func @transform_7(%arg0: i32, %arg1: i32, %arg2: i32) -> (i32, i32) {
    %c0_i32 = arith.constant 0 : i32
    %c0_i32_0 = arith.constant 0 : i32
    %c0_i32_1 = arith.constant 0 : i32
    return %c0_i32, %c0_i32_0 : i32, i32
  }
  func.func @transform_8(%arg0: i32, %arg1: i32, %arg2: i32) -> (i32, i32, i32) {
    %0 = arith.muli %arg1, %arg2 : i32
    %c0_i32 = arith.constant 0 : i32
    %c0_i32_0 = arith.constant 0 : i32
    return %arg0, %c0_i32, %0 : i32, i32, i32
  }
}

</mosaic_0001>

<bundles_post_ra>
// kernel: tpu_custom_call.1
= control target key start
LH: loop header
LB: loop body
LE: loop exit
PB: predicated region body
PF: predicated region fallthrough
CT: control target
= control target key end

     0   :  { %13 = vsyncpa [#allocation5], 0  ;;  %s2036_s0 = inlined_call_operand.vmem [shape: bf16[2,4,512], index: 0, kind: input, shape index: {}]   ;;  %s2037_s1 = inlined_call_operand.vmem [shape: f32[3,256], index: 1, kind: input, shape index: {}]   ;;  %s2038_s2 = inlined_call_operand.vmem [shape: f32[2,16,2], index: 2, kind: input, shape index: {}]   ;;  %s2039_s3 = inlined_call_operand.vmem [shape: bf16[16,36], index: 3, kind: input, shape index: {}]   ;;  %s2040_s4 = inlined_call_operand.vmem [shape: bf16[8,16], index: 4, kind: input, shape index: {}]   ;;  %s2041_s5 = inlined_call_operand.vmem [shape: f32[8,2], index: 5, kind: input, shape index: {}]   ;;  %s2042_s6 = inlined_call_operand.vmem [shape: bf16[8,4], index: 6, kind: input, shape index: {}]   ;;  %s2043_s7 = inlined_call_operand.vmem [shape: f32[8,8], index: 7, kind: input, shape index: {}]   ;;  %s2044_s8 = inlined_call_operand.hbm [shape: f32[2,8,256], index: 8, kind: output, shape index: {}]  }
   0x1   :  { %15 = vsyncpa [#allocation5 + $0x1], 0  ;;  %s1750_s27 = smov 0   ;;  %s1752_s28 = smov 0  }
   0x2   :  { %s1754_s29 = smov 0   ;;  %s1756_s30 = smov 0  }
   0x3   :  { %s1758_s9 = smov 0   ;;  %s1760_s10 = smov 0  }
   0x4   :  { %s1762_s11 = smov 0   ;;  %s1764_s12 = smov 0  }
   0x5   :  { %s1766_s13 = smov 0   ;;  %s1768_s14 = smov 0  }
   0x6 LB: > { %2057 = sst [smem:[#allocation7_spill]] %s1639_s27  ;;  %s1303_s15 = sadd.s32 4294967295, %s1675_s14   ;;  %s1675_s14 = sphi %s1768_s14, %s21_s14   ;;  %s1671_s13 = sphi %s1766_s13, %s2081_s13   ;;  %s1667_s12 = sphi %s1764_s12, %s2080_s12   ;;  %s1663_s11 = sphi %s1762_s11, %s2079_s11   ;;  %s1659_s10 = sphi %s1760_s10, %s2078_s10   ;;  %s1655_s9 = sphi %s1758_s9, %s2077_s9   ;;  %s1651_s30 = sphi %s1756_s30, %s2076_s30   ;;  %s1647_s29 = sphi %s1754_s29, %s2075_s29   ;;  %s1643_s28 = sphi %s1752_s28, %s2083_s28   ;;  %s1639_s27 = sphi %s1750_s27, %s2082_s27  }
   0x7   : > { %2058 = sst [smem:[#allocation8_spill]] %s1647_s29  ;;  %s1304_s16 = sadd.s32 4294967294, %s1675_s14  }
   0x8   : > { %2059 = sst [smem:[#allocation9_spill]] %s1663_s11  ;;  %s33_s17 = sadd.s32 1, %s1663_s11 }
   0x9   : > { %2060 = sst [smem:[#allocation10_spill]] %s1667_s12  ;;  %p34_p0 = scmp.ge.s32.totalorder %s33_s17, 2 }
   0xa   : > { %2061 = sst [smem:[#allocation11_spill]] %s1671_s13  ;;  %s36_s18 = sadd.s32 1, %s1667_s12 }
   0xb   : > { %2062 = sst [smem:[#allocation12_spill]] %s1675_s14  ;;  %s40_s19 = sadd.s32 1, %s1671_s13 }
   0xc   : > { %s227_s20 = smul.u32 %s1663_s11, %s1667_s12  ;;  %s2085_s17 = smov (%p34_p0, %s33_s17), 0 }
   0xd   : > { %2063 = sst [smem:[#allocation13_spill]] %s2085_s17  ;;  %s2087_s18 = smov (!%p34_p0, %s36_s18), %s1667_s12 }
   0xe   : > { %p244_p1 = scmp.ne.s32.totalorder %s1647_s29, %s1643_s28  ;;  %p245_p2 = scmp.eq.s32.totalorder %s1303_s15, 7 }
   0xf   : > { %p38_p3 = scmp.ge.s32.totalorder %s2087_s18, 2  ;;  %p250_p4 = scmp.ne.s32.totalorder %s1643_s28, %s1639_s27 }
  0x10   : > { %p1814_p5 = por %p245_p2, %p244_p1  ;;  %p251_p6 = scmp.eq.s32.totalorder %s1304_s16, 7 }
  0x11   : > { %s2089_s18 = smov (%p38_p3, %s2087_s18), 0  ;;  %s2091_s19 = smov (!%p38_p3, %s40_s19), %s1671_s13 }
  0x12   : > { %2065 = sst [smem:[#allocation14_spill]] %s2089_s18  ;;  %s228_s22 = smul.u32 %s2089_s18, %s2085_s17 }
  0x13   : > { %p1823_p7 = por %p251_p6, %p250_p4  ;;  %p42_p8 = scmp.ge.s32.totalorder %s2091_s19, 2 }
  0x14   : > { %p1307_p9 = scmp.ge.s32.totalorder %s1675_s14, 1  ;;  %s230_s24 = ssub.s32 %s227_s20, %s228_s22 }
  0x15   : > { %s2066_s23 = scalar_select %p1823_p7, 1, 0 }
  0x16   : > { %p307_p10 = scmp.lt.s32.totalorder %s1675_s14, 9  ;;  %s2093_s19 = smov (%p42_p8, %s2091_s19), 0 }
  0x17   : > { %2067 = sst [smem:[#allocation15_spill]] %s2066_s23  ;;  %s229_s25 = ssub.s32 %s1671_s13, %s2093_s19 }
  0x18   : > { %2068 = sst [smem:[#allocation16_spill]] %s2093_s19  ;;  %p308_p11 = pnand %p1307_p9, %p307_p10 }
  0x19   : > { %s231_s26 = sor.u32 %s230_s24, %s229_s25  ;;  %s234_s15 = sadd.s32 1, %s1647_s29 }
  0x1a   : > { %p232_p12 = scmp.eq.s32.totalorder %s231_s26, 0  ;;  %311 = sbr.rel (%p308_p11) target bundleno = 1247 (0x4df), region = 52 }
  0x1b   : > { %s2052_s20 = sand.u32 (!%p308_p11), 1, %s1643_s28   ;;  %p350_p13 = scmp.lt.s32.totalorder (!%p308_p11), %s1659_s10, 1 }
  0x1c   : > { %s1835_s16 = scalar_select %p232_p12, %s1647_s29, %s234_s15  }
  0x1d   : > { %s1841_s22 = sshll.u32 (!%p308_p11), %s2052_s20, 3  ;;  %p355_p0 = scmp.lt.s32.totalorder (!%p308_p11), %s1651_s30, 1 }
  0x1e   : > { %2069 = sst [smem:[#allocation17_spill]] %s1835_s16  ;;  %s1845_s24 = sshll.u32 (!%p308_p11), %s1651_s30, 7 }
  0x1f   : > { %s351_s25 = scalar_select %p350_p13, %s1659_s10, 1 }
  0x20   : > { %s356_s26 = scalar_select %p355_p0, %s1651_s30, 1 }
  0x21   : > { %s1342_s15 = sshll.u32 %s351_s25, 3  ;;  %s1343_s19 = sshll.u32 %s351_s25, 4 }
  0x22   : > { %s1852_s13 = scalar_lea.vmem %s2036_s0, %s1342_s15  ;;  %s1311_s12 = sshll.u32 %s356_s26, 2 }
  0x23   : > { %s1857_s29 = scalar_lea.vmem %s2037_s1, %s1311_s12  ;;  %s1862_s27 = scalar_lea.vmem %s2038_s2, %s1343_s19 }
  0x24   : > { %s349_s14 = scalar_lea.vmem [#allocation4], %s1841_s22  ;;  %p1315_p1 = scmp.ne.s32.totalorder %s1655_s9, 0 }
  0x25   : > { %p1316_p2 = scmp.ne.s32.totalorder (!%p1315_p1), %s1651_s30, 0 }
  0x26   : > { %370 = sbr.rel (%p1315_p1) target bundleno = 772 (0x304), region = 56 }
  0x2b   : > { %374 = sbr.rel (%p1316_p2) target bundleno = 50 (0x32), region = 60 }
  0x30   : > { %vm375_vm0 = vcmask 7168   ;;  %v1677_v0 = vmov 0.0  }
  0x31   : > { %376 = vst.msk [vmem:[#allocation3] sm:$0xff] %vm375_vm0, %v1677_v0 }
  0x32 PF: > { %v1870_v1 = vld [vmem:[%s2039_s3] sm:$0xff]   ;;  %v396_v2 = vlaneseq  ;;  %s377_s12 = sshra.s32 %s1845_s24, 7  ;;  %s1678_s18 = smov 116   ;;  %v1679_v3 = vmov 1983009808   ;;  %v1680_v6 = vmov 0.0  }
  0x33   : > { %390 = vrot.lane.b32.xlu1 %v1870_v1, %s1678_s18  ;;  %s1317_s19 = sshll.u32 %s377_s12, 1  ;;  %v394_v4 = vunpack.c.l.s4 %v1679_v3  ;;  %1368 = vmatprep.subr.bf16.mxu0 %v1680_v6  ;;  %vm1681_vm1 = vmmov 0   ;;  %s1682_s16 = smov 1   ;;  %v1693_v14 = vmov 0   ;;  %v921_v15 = vld [vmem:[%s1862_s27 + $0x8] sm:$0xff]  ;;  %v920_v16 = vld [vmem:[%s1862_s27] sm:$0xff] }
  0x34   : > { %v1876_v5 = vshrl.u32 %v396_v2, 7  ;;  %s380_s23 = scalar_lea.vmem %s1852_s13, %s1317_s19  ;;  %1374 = vmatprep.subr.bf16.mxu1 %v1680_v6  ;;  %1370 = vmatprep.mubr.msk.bf16.mxu0 %vm1681_vm1, %v1680_v6  ;;  %s1683_s20 = smov 17   ;;  %v1697_v17 = vmov 1   ;;  %vm405_vm2 = vcmask 7168   ;;  %vm411_vm3 = vcmask 1041408   ;;  %v948_v59 = vld [vmem:[%s2041_s5] sm:$0xff] }
  0x35   : > { %v395_v7 = vunpack.c.0.s8 %v394_v4  ;;  %v381_v8 = vld [vmem:[%s380_s23] sm:$0x3f]  ;;  %1376 = vmatprep.mubr.msk.bf16.mxu1 %vm1681_vm1, %v1680_v6  ;;  %s1684_s25 = smov 113   ;;  %s1685_s26 = smov 104   ;;  %1554 = vset.pattern.permute.xlu1 %v1693_v14  ;;  %vm460_vm4 = vcmask 138240   ;;  %vm407_vm5 = vcmask 31744  }
  0x36   : > { %v511_v12 = vcombine.high %v381_v8, %v381_v8  ;;  %s1686_s15 = smov 16   ;;  %s1687_s17 = smov 124   ;;  %1553 = vset.pattern.permute.xlu0 %v1693_v14  ;;  %vm523_vm6 = vcmask 924672   ;;  %vm637_vm7 = vcmask 130048   ;;  %vm692_vm8 = vcmask 916480  }
  0x37   : > { %v398_v9 = vsub.s32 %v395_v7, %v1876_v5  ;;  %s1688_s11 = smov 112   ;;  %s1689_s18 = smov 127   ;;  %vm751_vm9 = vcmask 1039360   ;;  %vm806_vm10 = vcmask 121856   ;;  %vm861_vm11 = vcmask 908288  }
  0x38   : > { %s1690_s19 = smov 108   ;;  %s1691_s23 = smov 100  }
  0x39   : > { %v399_v10 = vrot.slane %v381_v8, %v398_v9  ;;  %v518_v13 = vrot.slane %v511_v12, %v398_v9 }
  0x3b   : > { %401 = vrot.lane.b32.xlu0 %v399_v10, %s1682_s16  ;;  %v1886_v11 = vcombine.high %v399_v10, %v399_v10  ;;  %456 = vrot.lane.b32.xlu1 %v399_v10, %s1683_s20 }
  0x3d   : > { %v588_v31 = vsel %vm411_vm3, %v1886_v11, 0 }
  0x3f   : > { %403 = vrot.lane.b32.xlu0 %v1886_v11, %s1682_s16  ;;  %519 = vrot.lane.b32.xlu1 %v1886_v11, %s1684_s25  ;;  %s1692_s16 = smov 15  }
  0x43   : > { %458 = vrot.lane.b32.xlu0 %v1886_v11, %s1683_s20  ;;  %509 = vrot.lane.b32.xlu1 %v1870_v1, %s1685_s26  ;;  %s1694_s20 = smov 111   ;;  %s1696_s26 = smov 120  }
  0x47   : > { %521 = vrot.lane.b32.xlu0 %v518_v13, %s1684_s25  ;;  %635 = vrot.lane.b32.xlu1 %v1886_v11, %s1686_s15  ;;  %s1695_s25 = smov 96  }
  0x4b   : > { %633 = vrot.lane.b32.xlu0 %v399_v10, %s1686_s15  ;;  %631 = vrot.lane.b32.xlu1 %v1870_v1, %s1687_s17 }
  0x4f   : > { %582 = vrot.lane.b32.xlu0 %v1870_v1, %s1688_s11  ;;  %690 = vrot.lane.b32.xlu1 %v518_v13, %s1688_s11 }
  0x53   : > { %688 = vrot.lane.b32.xlu0 %v1886_v11, %s1688_s11  ;;  %749 = vrot.lane.b32.xlu1 %v518_v13, %s1689_s18  ;;  %s1329_s11 = sshll.u32 %s377_s12, 3 }
  0x57   : > { %747 = vrot.lane.b32.xlu0 %v1886_v11, %s1689_s18  ;;  %745 = vrot.lane.b32.xlu1 %v1870_v1, %s1690_s19  ;;  %s1000_s18 = scalar_lea.vmem [#allocation2], %s1329_s11 }
  0x5b   : > { %686 = vrot.lane.b32.xlu0 %v1870_v1, %s1691_s23  ;;  %804 = vrot.lane.b32.xlu1 %v1886_v11, %s1692_s16 }
  0x5f   : > { %802 = vrot.lane.b32.xlu0 %v399_v10, %s1692_s16  ;;  %859 = vrot.lane.b32.xlu1 %v518_v13, %s1694_s20 }
  0x63   : > { %857 = vrot.lane.b32.xlu0 %v1886_v11, %s1694_s20  ;;  %855 = vrot.lane.b32.xlu1 %v1870_v1, %s1695_s25 }
  0x67   : > { %800 = vrot.lane.b32.xlu0 %v1870_v1, %s1696_s26  ;;  %929 = vperm.xlu1 %1554, %v921_v15  }
  0x6b   : > { %924 = vperm.xlu0 %1553, %v920_v16   ;;  %1555 = vset.pattern.permute.xlu1 %v1697_v17 }
  0x6c   : > { %935 = vperm.xlu1 %1555, %v920_v16  }
  0x6f   : > { %1556 = vset.pattern.permute.xlu0 %v1697_v17 }
  0x70   : > { %939 = vperm.xlu0 %1556, %v921_v15   ;;  %1557 = vset.pattern.permute.xlu1 %v1693_v14 }
  0x71   : > { %951 = vperm.xlu1 %1557, %v948_v59  }
  0x74   : > { %1558 = vset.pattern.permute.xlu0 %v1693_v14 }
  0xa5   : > { %v391_v18 = vpop.permute.xlu1 %390 }
  0xad   : > { %v402_v19 = vpop.permute.xlu0 %401  ;;  %v457_v20 = vpop.permute.xlu1 %456 }
  0xb1   : > { %v404_v21 = vpop.permute.xlu0 %403  ;;  %v520_v22 = vpop.permute.xlu1 %519 }
  0xb2   : > { %v406_v23 = vsel %vm405_vm2, %v402_v19, %v404_v21 }
  0xb3   : > { %v413_v24 = vsel %vm411_vm3, %v406_v23, 0 }
  0xb4   : > { %1369 = vmatpush3.bf16.msra.mxu0 %v413_v24  ;;  %v576_v24 = vsub.s32 0, %v1876_v5 }
  0xb5   : > { %v459_v25 = vpop.permute.xlu0 %458  ;;  %v510_v26 = vpop.permute.xlu1 %509  ;;  %1380 = vmatprep.subr.bf16.mxu0 %v1680_v6 }
  0xb6   : > { %v461_v27 = vsel %vm460_vm4, %v457_v20, %v459_v25 }
  0xb7   : > { %1371 = vmatmul.mubr.msk.bf16.vlgmr.msra.gmra.mxu0 %vm407_vm5, %v391_v18  ;;  %v466_v28 = vsel %vm411_vm3, %v461_v27, 0 }
  0xb8   : > { %1375 = vmatpush3.bf16.msra.mxu1 %v466_v28  ;;  %1382 = vmatprep.mubr.msk.bf16.mxu0 %vm1681_vm1, %v1680_v6  ;;  %v914_v28 = vsub.s32 1, %v1876_v5 }
  0xb9   : > { %v522_v29 = vpop.permute.xlu0 %521  ;;  %v636_v30 = vpop.permute.xlu1 %635  ;;  %1386 = vmatprep.subr.bf16.mxu1 %v1680_v6 }
  0xba   : > { %v524_v32 = vsel %vm523_vm6, %v520_v22, %v522_v29 }
  0xbb   : > { %v529_v33 = vsel %vm411_vm3, %v524_v32, 0  ;;  %1377 = vmatmul.mubr.msk.bf16.vlgmr.msra.gmra.mxu1 %vm407_vm5, %v1870_v1 }
  0xbc   : > { %1381 = vmatpush3.bf16.msra.mxu0 %v529_v33  ;;  %1387 = vmatpush3.bf16.msra.mxu1 %v588_v31 }
  0xbd   : > { %v634_v34 = vpop.permute.xlu0 %633  ;;  %1392 = vmatprep.subr.bf16.mxu0 %v1680_v6  ;;  %v632_v35 = vpop.permute.xlu1 %631  ;;  %1388 = vmatprep.mubr.msk.bf16.mxu1 %vm1681_vm1, %v1680_v6 }
  0xbe   : > { %v638_v36 = vsel %vm637_vm7, %v634_v34, %v636_v30  ;;  %1398 = vmatprep.subr.bf16.mxu1 %v1680_v6 }
  0xbf   : > { %v643_v37 = vsel %vm411_vm3, %v638_v36, 0  ;;  %1383 = vmatmul.mubr.msk.bf16.vlgmr.msra.gmra.mxu0 %vm407_vm5, %v510_v26  ;;  %v384_v26 = vld [vmem:[%s1857_s29] sm:$0x7] }
  0xc0   : > { %1393 = vmatpush3.bf16.msra.mxu0 %v643_v37  ;;  %1394 = vmatprep.mubr.msk.bf16.mxu0 %vm1681_vm1, %v1680_v6  ;;  %v577_v30 = vrot.slane %v384_v26, %v576_v24  ;;  %v915_v37 = vrot.slane %v384_v26, %v914_v28 }
  0xc1   : > { %v583_v38 = vpop.permute.xlu0 %582  ;;  %v691_v39 = vpop.permute.xlu1 %690  ;;  %1404 = vmatprep.subr.bf16.mxu0 %v1680_v6 }
  0xc3   : > { %1389 = vmatmul.mubr.msk.bf16.vlgmr.msra.gmra.mxu1 %vm407_vm5, %v583_v38 }
  0xc4   : > { %1400 = vmatprep.mubr.msk.bf16.mxu1 %vm1681_vm1, %v1680_v6 }
  0xc5   : > { %v689_v40 = vpop.permute.xlu0 %688  ;;  %v750_v41 = vpop.permute.xlu1 %749 }
  0xc6   : > { %v693_v42 = vsel %vm692_vm8, %v689_v40, %v691_v39 }
  0xc7   : > { %v698_v43 = vsel %vm411_vm3, %v693_v42, 0  ;;  %1395 = vmatmul.mubr.msk.bf16.vlgmr.msra.gmra.mxu0 %vm407_vm5, %v632_v35 }
  0xc8   : > { %1399 = vmatpush3.bf16.msra.mxu1 %v698_v43  ;;  %1406 = vmatprep.mubr.msk.bf16.mxu0 %vm1681_vm1, %v1680_v6 }
  0xc9   : > { %v748_v44 = vpop.permute.xlu0 %747  ;;  %v746_v45 = vpop.permute.xlu1 %745  ;;  %1410 = vmatprep.subr.bf16.mxu1 %v1680_v6 }
  0xca   : > { %v752_v46 = vsel %vm751_vm9, %v748_v44, %v750_v41 }
  0xcb   : > { %v757_v47 = vsel %vm411_vm3, %v752_v46, 0 }
  0xcc   : > { %1405 = vmatpush3.bf16.msra.mxu0 %v757_v47 }
  0xcd   : > { %v687_v48 = vpop.permute.xlu0 %686  ;;  %v805_v49 = vpop.permute.xlu1 %804  ;;  %1416 = vmatprep.subr.bf16.mxu0 %v1680_v6 }
  0xce   : > { %1401 = vmatmul.mubr.msk.bf16.vlgmr.msra.gmra.mxu1 %vm407_vm5, %v687_v48 }
  0xcf   : > { %1407 = vmatmul.mubr.msk.bf16.vlgmr.msra.gmra.mxu0 %vm407_vm5, %v746_v45  ;;  %1412 = vmatprep.mubr.msk.bf16.mxu1 %vm1681_vm1, %v1680_v6 }
  0xd0   : > { %1418 = vmatprep.mubr.msk.bf16.mxu0 %vm1681_vm1, %v1680_v6 }
  0xd1   : > { %v803_v50 = vpop.permute.xlu0 %802  ;;  %v860_v52 = vpop.permute.xlu1 %859 }
  0xd2   : > { %v807_v51 = vsel %vm806_vm10, %v803_v50, %v805_v49 }
  0xd3   : > { %v812_v53 = vsel %vm411_vm3, %v807_v51, 0 }
  0xd4   : > { %1411 = vmatpush3.bf16.msra.mxu1 %v812_v53 }
  0xd5   : > { %v858_v54 = vpop.permute.xlu0 %857  ;;  %1422 = vmatprep.subr.bf16.mxu1 %v1680_v6  ;;  %v856_v57 = vpop.permute.xlu1 %855 }
  0xd6   : > { %v862_v55 = vsel %vm861_vm11, %v858_v54, %v860_v52 }
  0xd7   : > { %v867_v56 = vsel %vm411_vm3, %v862_v55, 0 }
  0xd8   : > { %1417 = vmatpush3.bf16.msra.mxu0 %v867_v56 }
  0xd9   : > { %v801_v58 = vpop.permute.xlu0 %800 }
  0xda   : > { %1413 = vmatmul.mubr.msk.bf16.vlgmr.msra.gmra.mxu1 %vm407_vm5, %v801_v58 }
  0xdb   : > { %1419 = vmatmul.mubr.msk.bf16.vlgmr.msra.gmra.mxu0 %vm407_vm5, %v856_v57  ;;  %1424 = vmatprep.mubr.msk.bf16.mxu1 %vm1681_vm1, %v1680_v6 }
  0xe2   : > { %v930_v45 = vpop.permute.xlu1 %929 }
  0xe6   : > { %v925_v51 = vpop.permute.xlu0 %924 }
  0xe7   : > { %v936_v59 = vpop.permute.xlu1 %935 }
 0x177   : > { %v449_v60 = vpop.f32.mrf.mxu0 }
 0x179   : > { %v1372_v61 = vpop.f32.mrf.mxu0 }
 0x17a   : > { %v940_v61 = vpop.permute.xlu0 %939 }
 0x17b   : > { %v452_v62 = vpop.f32.mrf.mxu0  ;;  %v502_v63 = vpop.f32.mrf.mxu1 }
 0x17c   : > { %v503_v27 = vadd.f32 %v502_v63, %v449_v60 }
 0x17d   : > { %v1373_v0 = vpop.f32.mrf.mxu0  ;;  %v1378_v1 = vpop.f32.mrf.mxu1 }
 0x17f   : > { %v505_v2 = vpop.f32.mrf.mxu1  ;;  %v565_v3 = vpop.f32.mrf.mxu0 }
 0x180   : > { %v572_v29 = vadd.f32 %v565_v3, %v503_v27  ;;  %v506_v33 = vadd.f32 %v505_v2, %v452_v62 }
 0x181   : > { %v1379_v4 = vpop.f32.mrf.mxu1  ;;  %v1384_v7 = vpop.f32.mrf.mxu0 }
 0x182   : > { %v578_v39 = vmul.f32 %v577_v30, %v572_v29  ;;  %v946_v4 = vld [vmem:[%s2040_s4] sm:$0xf]  ;;  %v952_v7 = vpop.permute.xlu1 %951 }
 0x183   : > { %v568_v8 = vpop.f32.mrf.mxu0  ;;  %v624_v9 = vpop.f32.mrf.mxu1 }
 0x184   : > { %v573_v40 = vadd.f32 %v568_v8, %v506_v33 }
 0x185   : > { %v1385_v10 = vpop.f32.mrf.mxu0  ;;  %v1390_v11 = vpop.f32.mrf.mxu1 }
 0x186   : > { %v579_v52 = vmul.f32 %v577_v30, %v573_v40 }
 0x187   : > { %v627_v6 = vpop.f32.mrf.mxu1  ;;  %v679_v12 = vpop.f32.mrf.mxu0 }
 0x188   : > { %v680_v31 = vadd.f32 %v679_v12, %v624_v9 }
 0x189   : > { %v1391_v13 = vpop.f32.mrf.mxu1  ;;  %v1396_v14 = vpop.f32.mrf.mxu0 }
 0x18a   : > { %v1002_v13 = vld [vmem:[#allocation3] sm:$0xff] }
 0x18b   : > { %v682_v15 = vpop.f32.mrf.mxu0 }
 0x18c   : > { %v683_v41 = vadd.f32 %v682_v15, %v627_v6 }
 0x18d   : > { %v1397_v16 = vpop.f32.mrf.mxu0 }
 0x18e   : > { %v734_v17 = vpop.f32.mrf.mxu1 }
 0x18f   : > { %v793_v18 = vpop.f32.mrf.mxu0  ;;  %v741_v34 = vadd.f32 %v734_v17, %v680_v31 }
 0x190   : > { %v1402_v19 = vpop.f32.mrf.mxu1 }
 0x191   : > { %v1408_v20 = vpop.f32.mrf.mxu0  ;;  %v743_v46 = vadd.f32 %v741_v34, %v578_v39 }
 0x192   : > { %v737_v21 = vpop.f32.mrf.mxu1 }
 0x193   : > { %v796_v22 = vpop.f32.mrf.mxu0  ;;  %v742_v47 = vadd.f32 %v737_v21, %v683_v41 }
 0x194   : > { %v1403_v23 = vpop.f32.mrf.mxu1 }
 0x195   : > { %v1409_v25 = vpop.f32.mrf.mxu0  ;;  %v744_v56 = vadd.f32 %v742_v47, %v579_v52 }
 0x19a   : > { %v848_v32 = vpop.f32.mrf.mxu1 }
 0x19b   : > { %v849_v35 = vadd.f32 %v848_v32, %v793_v18  ;;  %v903_v36 = vpop.f32.mrf.mxu0 }
 0x19c   : > { %v1414_v38 = vpop.f32.mrf.mxu1 }
 0x19d   : > { %v910_v42 = vadd.f32 %v903_v36, %v849_v35  ;;  %v1420_v43 = vpop.f32.mrf.mxu0 }
 0x19e   : > { %v851_v44 = vpop.f32.mrf.mxu1 }
 0x19f   : > { %v916_v5 = vmul.f32 %v915_v37, %v910_v42  ;;  %v852_v48 = vadd.f32 %v851_v44, %v796_v22  ;;  %v906_v49 = vpop.f32.mrf.mxu0 }
 0x1a0   : > { %v1415_v50 = vpop.f32.mrf.mxu1 }
 0x1a1   : > { %v911_v53 = vadd.f32 %v906_v49, %v852_v48  ;;  %v1421_v54 = vpop.f32.mrf.mxu0  ;;  %v918_v55 = vadd.f32 %v916_v5, %v743_v46 }
 0x1a3   : > { %v917_v57 = vmul.f32 %v915_v37, %v911_v53  ;;  %v932_v58 = vmul.f32 %v925_v51, %v918_v55 }
 0x1a5   : > { %v919_v60 = vadd.f32 %v917_v57, %v744_v56  ;;  %v942_v63 = vadd.f32 %v936_v59, %v932_v58 }
 0x1a7   : > { %v933_v62 = vmul.f32 %v930_v45, %v919_v60  ;;  %v944_v1 = vmax.f32 %v942_v63, 0.0 }
 0x1a9   : > { %v943_v0 = vadd.f32 %v940_v61, %v933_v62 }
 0x1ab   : > { %v945_v2 = vmax.f32 %v943_v0, 0.0 }
 0x1ad   : > { %v947_v3 = vpack.c.bf16 %v945_v2, %v944_v1 }
 0x1af   : > { %1423 = vmatpush3.bf16.msra.mxu1 %v947_v3 }
 0x1b2   : > { %1425 = vmatmul.mubr.msk.bf16.vlgmr.msra.gmra.mxu1 %vm637_vm7, %v946_v4 }
 0x272   : > { %v992_v8 = vpop.f32.mrf.mxu1 }
 0x273   : > { %v993_v9 = vadd.f32 %v992_v8, %v952_v7 }
 0x274   : > { %v1426_v10 = vpop.f32.mrf.mxu1 }
 0x275   : > { %v998_v11 = vmax.f32 %v993_v9, 0.0 }
 0x276   : > { %v995_v6 = vpop.f32.mrf.mxu1 }
 0x277   : > { %1001 = vst [vmem:[%s1000_s18] sm:$0xff] %v998_v11  ;;  %1003 = vadd.xlane.f32.xlu1 %v998_v11 }
 0x278   : > { %v1427_v12 = vpop.f32.mrf.mxu1 }
 0x300   : > { %v1004_v14 = vpop.xlane.xlu1 %1003 }
 0x301   : > { %v1005_v15 = vadd.f32 %v1004_v14, %v1002_v13 }
 0x303   : > { %1007 = vst.msk [vmem:[#allocation3] sm:$0xff] %vm405_vm2, %v1005_v15 }
 0x304 PF: > { %p1330_p3 = scmp.ne.s32.totalorder %s1655_s9, 1 }
 0x305   : > { %p1331_p4 = scmp.ne.s32.totalorder (!%p1330_p3), %s1651_s30, 0 }
 0x306   : > { %1011 = sbr.rel (%p1330_p3) target bundleno = 1221 (0x4c5), region = 64 }
 0x30b   : > { %1015 = sbr.rel (%p1331_p4) target bundleno = 1013 (0x3f5), region = 68 }
 0x310   : > { %v1017_v16 = vld [vmem:[#allocation3] sm:$0xff]  ;;  %v1016_v17 = vld [vmem:[%s2043_s7] sm:$0xff]  ;;  %vm1018_vm12 = vcmask 64512   ;;  %v1698_v18 = vmov 0.0   ;;  %vm1699_vm13 = vmmov 0   ;;  %vm1098_vm14 = vcmask 7168  }
 0x311   : > { %1428 = vmatprep.subr.mxu0 %v1698_v18  ;;  %1430 = vmatprep.mubr.msk.f32.mxu0 %vm1699_vm13, %v1698_v18 }
 0x312   : > { %1429 = vmatpush3.msra.mxu0 %v1017_v16 }
 0x313   : > { %1431 = vmatmul.mubr.msk.f32.vlgmr.msra.gmra.mxu0 %vm1018_vm12, %v1016_v17 }
 0x3d3   : > { %v1088_v19 = vpop.f32.mrf.mxu0 }
 0x3d4   : > { %v1333_v20 = vmul.f32 -1.442695, %v1088_v19 }
 0x3d5   : > { %v1432_v21 = vpop.f32.mrf.mxu0 }
 0x3d6   : > { %1561 = vpow2.f32 %v1333_v20 }
 0x3e3   : > { %v1562_v22 = vpop.eup %1561 }
 0x3e4   : > { %v1095_v23 = vadd.f32 1.0, %v1562_v22 }
 0x3e6   : > { %1563 = vrcp.f32 %v1095_v23 }
 0x3f3   : > { %v1564_v24 = vpop.eup %1563 }
 0x3f4   : > { %1099 = vst.msk [vmem:[#allocation3] sm:$0xff] %vm1098_vm14, %v1564_v24 }
 0x3f5 PF: > { %s1101_s23 = sadd.s32 128, %s1845_s24  ;;  %v1700_v25 = vmov 0.0   ;;  %vm1701_vm15 = vmmov 0   ;;  %vm1112_vm0 = vcmask 1041408   ;;  %v1702_v27 = vmov 0   ;;  %v1168_v30 = vld [vmem:[%s2041_s5] sm:$0xff] }
 0x3f6   : > { %1433 = vmatprep.subr.bf16.mxu0 %v1700_v25  ;;  %s1102_s16 = sshra.s32 %s1101_s23, 7  ;;  %1435 = vmatprep.mubr.msk.bf16.mxu0 %vm1701_vm15, %v1700_v25  ;;  %v1107_v31 = vld [vmem:[%s2042_s6] sm:$0xf]  ;;  %vm1108_vm1 = vcmask 31744   ;;  %v1703_v32 = vmov 1   ;;  %s1156_s17 = sshra.s32 %s1845_s24, 7 }
 0x3f7   : > { %s1334_s20 = sshll.u32 %s1102_s16, 1  ;;  %1565 = vset.pattern.permute.xlu0 %v1702_v27 }
 0x3f8   : > { %s1105_s25 = scalar_lea.vmem %s1852_s13, %s1334_s20  ;;  %s1336_s13 = sshll.u32 %s1156_s17, 3 }
 0x3f9   : > { %v1106_v28 = vld [vmem:[%s1105_s25] sm:$0x3]  ;;  %s1159_s11 = scalar_lea.vmem [#allocation2], %s1336_s13 }
 0x3fa   : > { %v1114_v29 = vsel %vm1112_vm0, %v1106_v28, 0  ;;  %v1160_v33 = vld [vmem:[%s1159_s11] sm:$0xff] }
 0x3fb   : > { %v1100_v26 = vld [vmem:[#allocation3] sm:$0xff]  ;;  %1434 = vmatpush3.bf16.msra.mxu0 %v1114_v29 }
 0x3fc   : > { %1163 = vperm.xlu0 %1565, %v1100_v26  }
 0x3fe   : > { %1436 = vmatmul.mubr.msk.bf16.vlgmr.msra.gmra.mxu0 %vm1108_vm1, %v1107_v31 }
 0x400   : > { %1566 = vset.pattern.permute.xlu0 %v1703_v32 }
 0x401   : > { %1171 = vperm.xlu0 %1566, %v1168_v30  }
 0x477   : > { %v1164_v34 = vpop.permute.xlu0 %1163 }
 0x478   : > { %v1166_v35 = vmul.f32 %v1164_v34, %v1160_v33 }
 0x47c   : > { %v1172_v37 = vpop.permute.xlu0 %1171 }
 0x4be   : > { %v1150_v36 = vpop.f32.mrf.mxu0 }
 0x4bf   : > { %v1167_v38 = vadd.f32 %v1166_v35, %v1150_v36 }
 0x4c0   : > { %v1437_v39 = vpop.f32.mrf.mxu0 }
 0x4c1   : > { %v1174_v40 = vadd.f32 %v1172_v37, %v1167_v38 }
 0x4c2   : > { %v1153_v41 = vpop.f32.mrf.mxu0 }
 0x4c3   : > { %1175 = vst [vmem:[%s349_s14] sm:$0xff] %v1174_v40 }
 0x4c4   : > { %v1438_v42 = vpop.f32.mrf.mxu0 }
 0x4c5 PF: > { %s1184_s24 = smul.u32 %s1651_s30, %s1655_s9  ;;  %s1338_s18 = sshll.u32 %s1659_s10, 1 }
 0x4c6   : > { %s1193_s12 = sshll.u32 %s349_s14, 4  ;;  %s2070_s26 = sand.u32 1, %s1643_s28   ;;  %s1194_s12 = int_to_ptr.vmem [resolvable:$true] %s1193_s12 }
 0x4c7   : > { %s1189_s19 = sadd.s32 %s1338_s18, %s1184_s24  ;;  %s1177_s27 = scalar_lea.sflag [#allocation5], %s2070_s26 }
 0x4c8   : > { %s1339_s23 = sshll.u32 %s1189_s19, 7  ;;  %s1567_s15 = scalar_lea.vmem %s1194_s12, 128 }
 0x4c9   : > { %s1191_s25 = scalar_lea.hbm %s2044_s8, %s1339_s23  ;;  %p1568_p6 = scmp.ne.s32.totalorder %s1194_s12, %s1567_s15 }
 0x4ca   : > { %s1704_s29 = smov [#allocation4]  }
 0x4cb   : > { %p1569_p8 = pnand %p1568_p6, %p1814_p5  ;;  %s1571_s17 = sshll.u32 %s1704_s29, 4  ;;  %s1572_s17 = int_to_ptr.vmem [resolvable:$false] %s1571_s17 }
 0x4cc   : > { %s1573_s30 = scalar_lea.vmem %s1572_s17, 256  ;;  %p1574_p10 = scmp.lt.s32.totalorder %s1194_s12, %s1572_s17 }
 0x4cd   : > { %p1570_p9 = pneg %p1569_p8  ;;  %p1575_p11 = scmp.lt.s32.totalorder %s1573_s30, %s1567_s15 }
 0x4cf   : > { %p1576_p12 = por %p1575_p11, %p1574_p10 }
 0x4d1   : > { %p1577_p13 = pnand %p1576_p12, %p1570_p9 }
 0x4d3   : > { %1580 = shalt.err (!%p1577_p13)
}
 0x4d4   : > { %s1581_s9 = scalar_lea.hbm %s1191_s25, 128  ;;  %s1585_s22 = scalar_lea.hbm %s2044_s8, 512 }
 0x4d5   : > { %p1582_p0 = scmp.ne.s32.totalorder %s1191_s25, %s1581_s9  ;;  %p1586_p3 = scmp.lt.s32.totalorder %s1191_s25, %s2044_s8 }
 0x4d6   : > { %p1587_p4 = scmp.lt.s32.totalorder %s1585_s22, %s1581_s9 }
 0x4d7   : > { %p1583_p1 = pnand %p1582_p0, %p1814_p5 }
 0x4d8   : > { %p1588_p6 = por %p1587_p4, %p1586_p3 }
 0x4d9   : > { %p1584_p2 = pneg %p1583_p1 }
 0x4db   : > { %p1589_p8 = pnand %p1588_p6, %p1584_p2 }
 0x4dd   : > { %1592 = shalt.err (!%p1589_p8)
}
 0x4de   : > { %1439 = dma.vmem_to_hbm [thread:$0]  (%p1814_p5), %s1194_s12, 128, %s1191_s25, %s1177_s27  }
 0x4df PF: > { %s2071_s24 = sld [smem:[#allocation12_spill]] }
 0x4e0   : > { %s2072_s18 = sld [smem:[#allocation7_spill]] }
 0x4e5   : > { %p1445_p9 = scmp.ge.s32.totalorder %s2071_s24, 2 }
 0x4e6   : > { %s1205_s23 = sand.u32 1, %s2072_s18  }
 0x4e7   : > { %p1442_p10 = pnand %p1445_p9, %p1823_p7  ;;  %s1206_s16 = scalar_lea.sflag [#allocation5], %s1205_s23 }
 0x4e9   : > { %p1443_p11 = pneg %p1442_p10 }
 0x4eb   : > { %1634 = dma.done.wait (%p1443_p11), %s1206_s16, 128  }
 0x4ec   : > { %1636 = vsyncadd (%p1443_p11), %s1206_s16, 4294967168  ;;  %s21_s14 = sadd.s32 1, %s2071_s24   ;;  %s2074_s20 = sld [smem:[#allocation8_spill]] }
 0x4ed   : > { %p18_p12 = scmp.ge.s32.totalorder %s21_s14, 10   ;;  %s2075_s29 = sld [smem:[#allocation17_spill]] }
 0x4ee   : > { %s2076_s30 = sld [smem:[#allocation9_spill]]  ;;  %s2082_s27 = smov %s1643_s28 }
 0x4ef   : > { %s2077_s9 = sld [smem:[#allocation10_spill]]  ;;  %20 = sbr.rel (!%p18_p12) target bundleno = 6 (0x6), region = 113 }
 0x4f0   : > { %s2078_s10 = sld [smem:[#allocation11_spill]] }
 0x4f1   : > { %s2079_s11 = sld [smem:[#allocation13_spill]] }
 0x4f2   : > { %s2080_s12 = sld [smem:[#allocation14_spill]]  ;;  %s2083_s28 = smov %s2074_s20 }
 0x4f3   : > { %s2081_s13 = sld [smem:[#allocation16_spill]] }
 0x4f4   :  { %1211 = vsyncpa [#allocation5], 1 }
 0x4f5   :  { %1213 = vsyncpa [#allocation5 + $0x1], 1 }

</bundles_post_ra>
